<compile_context>
chip_gen: v7x
topology: tpu7x:2x2x1
jax: 0.10.0
libtpu: 0.0.40
codegen_flags: <defaults>
</compile_context>

<pallas_src>
import functools

import numpy as np
import jax
import jax.numpy as jnp
from jax.experimental import pallas as pl
from jax.experimental.pallas import tpu as pltpu

NUM_NODES = 4

# Fixed graph ("club layout") from the module definition.
CLUB_LAYOUT = np.array(
    [[0.0, 1.0, 1.0, 1.0],
     [1.0, 0.0, 0.0, 0.0],
     [1.0, 0.0, 0.0, 1.0],
     [1.0, 0.0, 1.0, 0.0]],
    dtype=np.float32,
)


def _gcn_normalized_adj_np(adj: np.ndarray) -> np.ndarray:
    """Dense D^{-1/2}(A+I)D^{-1/2}, identical to GCNConv's gcn_norm (host-side, one-time)."""
    a_hat = adj + np.eye(adj.shape[0], dtype=adj.dtype)
    deg = a_hat.sum(axis=-1)
    d_inv_sqrt = np.where(deg > 0, 1.0 / np.sqrt(deg), 0.0)
    return (d_inv_sqrt[:, None] * a_hat * d_inv_sqrt[None, :]).astype(np.float32)


@functools.lru_cache(maxsize=None)
def _block_diag_adj(bsz: int):
    """(I_B kron A_norm): lets the whole batch share one flat M dimension in the kernel.

    The adjacency is a fixed module constant, so this is built with numpy once per batch
    size and cached -- it never shows up as a per-call XLA op.
    """
    a4 = _gcn_normalized_adj_np(CLUB_LAYOUT)
    blk = a4 if bsz == 1 else np.kron(np.eye(bsz, dtype=np.float32), a4)
    return jnp.asarray(blk)


def _choose_tiles(vibe_dim: int):
    """Pick (d_pad, tn).

    Small dims: no lane padding at all (full-extent blocks).
    Large dims: pad to a multiple of 128, tile columns preferring 256-multiples
    (v6e/v7x MXUs are 2x256^2); the footprint stays portable to v7x's 64 MiB VMEM.
    """
    if vibe_dim <= 512:
        return vibe_dim, vibe_dim
    d_pad = ((vibe_dim + 127) // 128) * 128
    for tn in (512, 256, 128):
        if d_pad % tn == 0:
            return d_pad, tn
    return d_pad, 128


def prepare_v1_graph_ode_params(weight, bias, *, use_bf16=True):
    """One-time preparation (call OUTSIDE the ODE solver loop).

    weight: [vibe_dim, vibe_dim] GCNConv linear weight (PyG convention: out x in).
    bias:   [vibe_dim].
    """
    weight = jnp.asarray(weight, jnp.float32)
    bias = jnp.asarray(bias, jnp.float32)
    vibe_dim = int(weight.shape[0])
    d_pad, tn = _choose_tiles(vibe_dim)

    w_dtype = jnp.bfloat16 if use_bf16 else jnp.float32
    wt = weight.T  # GCNConv applies x @ W^T; pre-transpose once.
    if d_pad == vibe_dim:
        wt_p = wt.astype(w_dtype)
        b_p = bias.reshape(1, vibe_dim)
    else:
        wt_p = jnp.zeros((d_pad, d_pad), w_dtype).at[:vibe_dim, :vibe_dim].set(
            wt.astype(w_dtype))
        b_p = jnp.zeros((1, d_pad), jnp.float32).at[0, :vibe_dim].set(bias)

    return dict(wt=wt_p, b=b_p, vibe_dim=vibe_dim, d_pad=d_pad, tn=tn)


def _gcn_ode_kernel(a_ref, h_ref, wt_ref, b_ref, o_ref):
    # 1) Tiny aggregation first: agg = blockdiag(A_norm) @ H.  M x M x d_pad flops
    #    (M = 4*bsz), negligible next to the weight matmul, so recomputing it per column
    #    panel keeps the kernel scratch-free and the grid axis safely "parallel".
    agg = jnp.dot(a_ref[...], h_ref[...], preferred_element_type=jnp.float32)
    # 2) Single well-shaped MXU matmul against the weight column panel (K = d_pad).
    hw = jnp.dot(agg.astype(wt_ref.dtype), wt_ref[...],
                 preferred_element_type=jnp.float32)
    # 3) f32 epilogue: bias add (VPU) + tanh (EUP).
    o_ref[...] = jnp.tanh(hw + b_ref[...])


@functools.partial(jax.jit, static_argnames=("vibe_dim", "d_pad", "tn"))
def _gcn_ode_call(a_blk, wt_p, b_p, h_flat, *, vibe_dim, d_pad, tn):
    m = h_flat.shape[0]               # 4 * bsz (static under jit)
    h_flat = h_flat.astype(jnp.float32)
    if d_pad != vibe_dim:
        h_p = jnp.zeros((m, d_pad), jnp.float32).at[:, :vibe_dim].set(h_flat)
    else:
        h_p = h_flat                  # small-dim path: no pad, no slice

    n_j = d_pad // tn
    w_itemsize = jnp.dtype(wt_p.dtype).itemsize

    flops = 2 * m * m * d_pad + 2 * m * d_pad * d_pad
    bytes_accessed = (a_blk.size * 4 + h_p.size * 4 + wt_p.size * w_itemsize
                      + b_p.size * 4 + m * d_pad * 4)
    cost = pl.CostEstimate(flops=flops, transcendentals=m * d_pad,
                           bytes_accessed=bytes_accessed)

    # VMEM budget: double-buffered weight column panel dominates.
    vmem_need = (2 * d_pad * tn * w_itemsize   # W^T panels (double-buffered)
                 + 2 * m * d_pad * 4           # H (resident across panels)
                 + 2 * m * tn * 4              # output blocks
                 + 2 * tn * 4                  # bias blocks
                 + 2 * m * m * 4)              # block-diag adjacency
    # 48 MiB cap: headroom under v7x's 64 MiB physical VMEM, well within v5e/v6e.
    vmem_limit = min(max(2 * vmem_need, 8 * 1024 * 1024), 48 * 1024 * 1024)

    out = pl.pallas_call(
        _gcn_ode_kernel,
        out_shape=jax.ShapeDtypeStruct((m, d_pad), jnp.float32),
        grid=(n_j,),
        in_specs=[
            pl.BlockSpec((m, m), lambda j: (0, 0)),        # blockdiag(A_norm), tiny
            pl.BlockSpec((m, d_pad), lambda j: (0, 0)),    # flattened batch of states
            pl.BlockSpec((d_pad, tn), lambda j: (0, j)),   # W^T column panel
            pl.BlockSpec((1, tn), lambda j: (0, j)),       # bias panel
        ],
        out_specs=pl.BlockSpec((m, tn), lambda j: (0, j)),
        compiler_params=pltpu.CompilerParams(
            # Column-panel axis is the only grid axis: disjoint output blocks, no carried
            # scratch -> safe for v7x megacore, and each core streams disjoint W panels.
            dimension_semantics=("parallel",),
            vmem_limit_bytes=vmem_limit),
        cost_estimate=cost,
    )(a_blk, h_p, wt_p, b_p)

    if d_pad != vibe_dim:
        out = out[:, :vibe_dim]
    return out


def v1_graph_ode_forward(t, h, params):
    """Single ODE RHS evaluation: h is [NUM_NODES, vibe_dim]."""
    del t  # dynamics are time-invariant, matching the PyTorch module
    return _gcn_ode_call(_block_diag_adj(1), params["wt"], params["b"], h,
                         vibe_dim=params["vibe_dim"], d_pad=params["d_pad"],
                         tn=params["tn"])


def v1_graph_ode_forward_batch(t, h_batch, params):
    """Batched independent evaluations: h_batch is [B, NUM_NODES, vibe_dim].

    The batch is folded into the matmul M dimension (one pallas_call, one weight stream).
    """
    del t
    bsz = int(h_batch.shape[0])
    h_flat = h_batch.reshape(bsz * NUM_NODES, h_batch.shape[-1])
    out = _gcn_ode_call(_block_diag_adj(bsz), params["wt"], params["b"], h_flat,
                        vibe_dim=params["vibe_dim"], d_pad=params["d_pad"],
                        tn=params["tn"])
    return out.reshape(bsz, NUM_NODES, params["vibe_dim"])


def _reference(t, h, weight, bias):
    """Pure-JAX f32 reference of GCNConv + tanh."""
    del t
    a_norm = jnp.asarray(_gcn_normalized_adj_np(CLUB_LAYOUT))
    return jnp.tanh(a_norm @ (h @ weight.T) + bias[None, :])


if __name__ == "__main__":
    vibe_dim = 32

    key = jax.random.PRNGKey(0)
    k_h, k_w, k_b, k_hb, k_w2, k_b2, k_h2 = jax.random.split(key, 7)

    h = jax.random.normal(k_h, (NUM_NODES, vibe_dim), dtype=jnp.float32)
    weight = jax.random.normal(k_w, (vibe_dim, vibe_dim), dtype=jnp.float32) * 0.1
    bias = jax.random.normal(k_b, (vibe_dim,), dtype=jnp.float32) * 0.1
    t = jnp.float32(0.0)

    ref = _reference(t, h, weight, bias)

    # bf16-weight fast path (f32 accumulation + f32 epilogue).
    params = prepare_v1_graph_ode_params(weight, bias, use_bf16=True)
    out = jax.block_until_ready(v1_graph_ode_forward(t, h, params))
    assert out.shape == (NUM_NODES, vibe_dim)
    assert jnp.allclose(out, ref, atol=2e-2, rtol=2e-2), "bf16 path mismatch vs. reference"

    # Batched evaluations folded into one matmul M dimension, one pallas_call.
    hb = jax.random.normal(k_hb, (3, NUM_NODES, vibe_dim), dtype=jnp.float32)
    outb = jax.block_until_ready(v1_graph_ode_forward_batch(t, hb, params))
    refb = jax.vmap(lambda x: _reference(t, x, weight, bias))(hb)
    assert outb.shape == (3, NUM_NODES, vibe_dim)
    assert jnp.allclose(outb, refb, atol=2e-2, rtol=2e-2), "batched bf16 path mismatch"

    # Exact f32 path check.
    params_f32 = prepare_v1_graph_ode_params(weight, bias, use_bf16=False)
    out32 = jax.block_until_ready(v1_graph_ode_forward(t, h, params_f32))
    assert jnp.allclose(out32, ref, atol=1e-5, rtol=1e-5), "f32 path mismatch vs. reference"

    # Column-panel-tiled path (vibe_dim > 512 -> grid over weight panels), f32, batched.
    vibe_big = 768
    w_big = jax.random.normal(k_w2, (vibe_big, vibe_big), dtype=jnp.float32) * 0.05
    b_big = jax.random.normal(k_b2, (vibe_big,), dtype=jnp.float32) * 0.05
    h_big = jax.random.normal(k_h2, (2, NUM_NODES, vibe_big), dtype=jnp.float32)
    params_big = prepare_v1_graph_ode_params(w_big, b_big, use_bf16=False)
    out_big = jax.block_until_ready(v1_graph_ode_forward_batch(t, h_big, params_big))
    ref_big = jax.vmap(lambda x: _reference(t, x, w_big, b_big))(h_big)
    assert out_big.shape == (2, NUM_NODES, vibe_big)
    assert jnp.allclose(out_big, ref_big, atol=1e-4, rtol=1e-4), "tiled f32 path mismatch"

    print("KERNEL_OK")
</pallas_src>

<mosaic_0001>
module attributes {stable_mosaic.version = 11 : i64} {
  func.func @_gcn_ode_kernel(%arg0: i32, %arg1: memref<4x4xf32, #tpu.memory_space<vmem>>, %arg2: memref<4x32xf32, #tpu.memory_space<vmem>>, %arg3: memref<32x32xbf16, #tpu.memory_space<vmem>>, %arg4: memref<1x32xf32, #tpu.memory_space<vmem>>, %arg5: memref<4x32xf32, #tpu.memory_space<vmem>>) attributes {dimension_semantics = [#tpu.dimension_semantics<parallel>], iteration_bounds = array<i64: 1>, scalar_prefetch = 0 : i64, scratch_operands = 0 : i64, tpu.core_type = #tpu.core_type<tc>, window_params = [{pipeline_mode = #tpu.pipeline_mode<synchronous>, transform_indices = @transform_0, window_bounds = array<i64: 4, 4>}, {pipeline_mode = #tpu.pipeline_mode<synchronous>, transform_indices = @transform_1, window_bounds = array<i64: 4, 32>}, {transform_indices = @transform_2, window_bounds = array<i64: 32, 32>}, {transform_indices = @transform_3, window_bounds = array<i64: 1, 32>}, {transform_indices = @transform_4, window_bounds = array<i64: 4, 32>}]} {
    %c0 = arith.constant 0 : index
    %c0_0 = arith.constant 0 : index
    %0 = vector.load %arg1[%c0, %c0_0] : memref<4x4xf32, #tpu.memory_space<vmem>>, vector<4x4xf32>
    %c0_1 = arith.constant 0 : index
    %c0_2 = arith.constant 0 : index
    %1 = vector.load %arg2[%c0_1, %c0_2] : memref<4x32xf32, #tpu.memory_space<vmem>>, vector<4x32xf32>
    %cst = arith.constant dense<0.000000e+00> : vector<4x32xf32>
    %2 = tpu.matmul %0, %1, %cst {dimension_numbers = #tpu.dot_dimension_numbers<[1], [0], [0], [1], [0, 0, 1, 1], [], []>} : vector<4x4xf32>, vector<4x32xf32>, vector<4x32xf32> -> vector<4x32xf32>
    %3 = arith.truncf %2 : vector<4x32xf32> to vector<4x32xbf16>
    %c0_3 = arith.constant 0 : index
    %c0_4 = arith.constant 0 : index
    %4 = vector.load %arg3[%c0_3, %c0_4] : memref<32x32xbf16, #tpu.memory_space<vmem>>, vector<32x32xbf16>
    %cst_5 = arith.constant dense<0.000000e+00> : vector<4x32xf32>
    %5 = tpu.matmul %3, %4, %cst_5 {dimension_numbers = #tpu.dot_dimension_numbers<[1], [0], [0], [1], [0, 0, 1, 1], [], []>} : vector<4x32xbf16>, vector<32x32xbf16>, vector<4x32xf32> -> vector<4x32xf32>
    %c0_6 = arith.constant 0 : index
    %c0_7 = arith.constant 0 : index
    %6 = vector.load %arg4[%c0_6, %c0_7] : memref<1x32xf32, #tpu.memory_space<vmem>>, vector<1x32xf32>
    %7 = vector.broadcast %6 : vector<1x32xf32> to vector<4x32xf32>
    %8 = arith.addf %5, %7 : vector<4x32xf32>
    %9 = math.tanh %8 : vector<4x32xf32>
    %c0_8 = arith.constant 0 : index
    %c0_9 = arith.constant 0 : index
    %10 = vector.load %arg5[%c0_8, %c0_9] : memref<4x32xf32, #tpu.memory_space<vmem>>, vector<4x32xf32>
    tpu.vector_store %arg5[%c0_8, %c0_9], %9 {strides = array<i32>} : memref<4x32xf32, #tpu.memory_space<vmem>>, vector<4x32xf32>,
    return
  }
  func.func @transform_0(%arg0: i32) -> (i32, i32) {
    %c0_i32 = arith.constant 0 : i32
    %c0_i32_0 = arith.constant 0 : i32
    %c0_i32_1 = arith.constant 0 : i32
    return %c0_i32, %c0_i32_0 : i32, i32
  }
  func.func @transform_1(%arg0: i32) -> (i32, i32) {
    %c0_i32 = arith.constant 0 : i32
    %c0_i32_0 = arith.constant 0 : i32
    %c0_i32_1 = arith.constant 0 : i32
    return %c0_i32, %c0_i32_0 : i32, i32
  }
  func.func @transform_2(%arg0: i32) -> (i32, i32) {
    %c0_i32 = arith.constant 0 : i32
    %c0_i32_0 = arith.constant 0 : i32
    return %c0_i32, %arg0 : i32, i32
  }
  func.func @transform_3(%arg0: i32) -> (i32, i32) {
    %c0_i32 = arith.constant 0 : i32
    %c0_i32_0 = arith.constant 0 : i32
    return %c0_i32, %arg0 : i32, i32
  }
  func.func @transform_4(%arg0: i32) -> (i32, i32) {
    %c0_i32 = arith.constant 0 : i32
    %c0_i32_0 = arith.constant 0 : i32
    return %c0_i32, %arg0 : i32, i32
  }
}

</mosaic_0001>

<bundles_post_ra>
// kernel: _gcn_ode_call.1
= control target key start
LH: loop header
LB: loop body
LE: loop exit
PB: predicated region body
PF: predicated region fallthrough
CT: control target
= control target key end

     0   :  { %9 = vsyncpa [#allocation3], 0  ;;  %s400_s0 = inlined_call_operand.hbm [shape: f32[4,4], index: 0, kind: input, shape index: {}]   ;;  %s401_s1 = inlined_call_operand.vmem [shape: f32[4,32], index: 1, kind: input, shape index: {}]   ;;  %s402_s2 = inlined_call_operand.hbm [shape: bf16[32,32], index: 2, kind: input, shape index: {}]   ;;  %s403_s3 = inlined_call_operand.vmem [shape: f32[1,32], index: 3, kind: input, shape index: {}]   ;;  %s404_s4 = inlined_call_operand.hbm [shape: f32[4,32], index: 4, kind: output, shape index: {}]  }
   0x1   :  { %10 = vsyncpa [#allocation6], 0 }
   0x2   :  { %11 = vsyncpa [#allocation4], 0  ;;  %s319_s15 = smov [#allocation2]   ;;  %s320_s17 = smov [#allocation5]  }
   0x3   :  { %s18_s16 = sshll.u32 %s319_s15, 4  ;;  %s29_s18 = sshll.u32 %s320_s17, 4  ;;  %s19_s16 = int_to_ptr.vmem [resolvable:$true] %s18_s16  ;;  %s351_s18 = int_to_ptr.vmem [resolvable:$true] %s29_s18 }
   0x4   :  { %s247_s21 = scalar_lea.hbm %s400_s0, 64 }
   0x5   :  { %p248_p0 = scmp.ne.s32.totalorder %s400_s0, %s247_s21  ;;  %p251_p1 = scmp.lt.u32.totalorder %s247_s21, %s400_s0 }
   0x7   :  { %p253_p2 = pnand %p251_p1, %p248_p0 }
   0x9   :  { %256 = shalt.err (!%p253_p2)
}
   0xa   :  { %s257_s26 = scalar_lea.vmem %s19_s16, 64  ;;  %p262_p4 = scmp.lt.s32.totalorder %s19_s16, %s19_s16 }
   0xb   :  { %p258_p3 = scmp.ne.s32.totalorder %s19_s16, %s257_s26  ;;  %p263_p5 = scmp.lt.s32.totalorder %s257_s26, %s257_s26 }
   0xd   :  { %p264_p6 = por %p263_p5, %p262_p4 }
   0xf   :  { %p265_p7 = pnand %p264_p6, %p258_p3 }
  0x11   :  { %268 = shalt.err (!%p265_p7)
}
  0x12   :  { %21 = dma.hbm_to_vmem [thread:$0]  %s400_s0, 64, %s19_s16, [#allocation3]  }
  0x13   :  { %s269_s5 = scalar_lea.hbm %s402_s2, 256 }
  0x14   :  { %p270_p8 = scmp.ne.s32.totalorder %s402_s2, %s269_s5  ;;  %p273_p9 = scmp.lt.u32.totalorder %s269_s5, %s402_s2 }
  0x16   :  { %p275_p10 = pnand %p273_p9, %p270_p8 }
  0x18   :  { %278 = shalt.err (!%p275_p10)
}
  0x19   :  { %s279_s10 = scalar_lea.vmem %s351_s18, 256  ;;  %p284_p12 = scmp.lt.s32.totalorder %s351_s18, %s351_s18 }
  0x1a   :  { %p280_p11 = scmp.ne.s32.totalorder %s351_s18, %s279_s10  ;;  %p285_p13 = scmp.lt.s32.totalorder %s279_s10, %s279_s10 }
  0x1c   :  { %p286_p0 = por %p285_p13, %p284_p12 }
  0x1e   :  { %p287_p1 = pnand %p286_p0, %p280_p11 }
  0x20   :  { %290 = shalt.err (!%p287_p1)
}
  0x21   :  { %s321_s0 = smov 64   ;;  %s322_s11 = smov 4  }
  0x22   :  { %35 = dma.hbm_to_vmem [thread:$0]  %s402_s2, 256, %s351_s18, [#allocation6], %s321_s0, %s321_s0, %s322_s11  }
  0x23   :  { %313 = dma.done.wait [#allocation3], 64  }
  0x24   :  { %314 = vsyncadd [#allocation3], 4294967232 }
  0x25   :  { %315 = dma.done.wait [#allocation6], 256  }
  0x26   :  { %316 = vsyncadd [#allocation6], 4294967040  ;;  %v323_v0 = vmov 0.0   ;;  %vm324_vm0 = vmmov 0   ;;  %vm51_vm1 = vcmask 1043456   ;;  %vm47_vm2 = vcmask 31744  }
  0x27   :  { %223 = vmatprep.subr.mxu0 %v323_v0  ;;  %225 = vmatprep.mubr.msk.f32.mxu0 %vm324_vm0, %v323_v0  ;;  %v46_v1 = vld [vmem:[%s401_s1] sm:$0xf]  ;;  %v243_v3 = vld [vmem:[#allocation5] sm:$0xff]   ;;  %v244_v4 = vld [vmem:[#allocation5 + $0x8] sm:$0xff]   ;;  %vm149_vm3 = vcmask 261120   ;;  %s325_s1 = smov [#allocation7]  }
  0x28   :  { %228 = vmatprep.subr.bf16.mxu1 %v323_v0  ;;  %232 = vmatprep.mubr.msk.bf16.mxu1 %vm324_vm0, %v323_v0  ;;  %v45_v2 = vld [vmem:[#allocation2] sm:$0xf]  ;;  %s202_s17 = sshll.u32 %s325_s1, 4  ;;  %vm194_vm4 = vcmask 257024   ;;  %s203_s17 = int_to_ptr.vmem [resolvable:$true] %s202_s17 }
  0x29   :  { %224 = vmatpush3.msk.msra.mxu0 %vm51_vm1, %v46_v1  ;;  %229 = vmatpush3.bf16.msra.mxu1 %v243_v3  ;;  %v214_v8 = vld [vmem:[%s403_s3] ss:$0 sm:$0xff]  ;;  %s291_s18 = scalar_lea.vmem %s203_s17, 64  ;;  %p296_p3 = scmp.lt.s32.totalorder %s203_s17, %s203_s17 }
  0x2a   :  { %226 = vmatmul.mubr.msk.f32.vlgmr.msra.gmra.mrb[0].mxu0 %vm47_vm2, %v45_v2  ;;  %230 = vmatprep.subr.bf16.mxu1 %v323_v0  ;;  %p292_p2 = scmp.ne.s32.totalorder %s203_s17, %s291_s18  ;;  %p297_p4 = scmp.lt.s32.totalorder %s291_s18, %s291_s18 }
  0x2c   :  { %p298_p5 = por %p297_p4, %p296_p3 }
  0x2d   :  { %231 = vmatpush3.bf16.msra.mxu1 %v244_v4 }
  0x2e   :  { %p299_p6 = pnand %p298_p5, %p292_p2 }
  0xfd   :  { %v121_v5 = vpop.f32.mrb[0].mxu0 }
  0xfe   :  { %v125_v6 = vpack.c.bf16 %v121_v5, %v121_v5  ;;  %v227_v7 = vpop.f32.mrb[1].mxu0 }
 0x100   :  { %233 = vmatmul.mubr.msk.bf16.vlgmr.msra.gmra.mrb[0].mxu1 %vm149_vm3, %v125_v6 }
 0x1d3   :  { %v187_v9 = vpop.f32.mrb[0].mxu1 }
 0x1d4   :  { %v188_v10 = vadd.f32 %v214_v8, %v187_v9  ;;  %v234_v11 = vpop.f32.mrb[1].mxu1 }
 0x1d5   :  { %v190_v12 = vpop.f32.mrb[2].mxu1 }
 0x1d6   :  { %245 = vtanh.f32 %v188_v10  ;;  %v235_v13 = vpop.f32.mrb[3].mxu1 }
 0x1e0   :  { %v246_v14 = vpop.eup %245 }
 0x1e1   :  { %195 = vst.msk [vmem:[#allocation7] sm:$0xf] %vm194_vm4, %v246_v14 }
 0x1e2   :  { %302 = shalt.err (!%p299_p6)
}
 0x1e3   :  { %s303_s20 = scalar_lea.hbm %s404_s4, 64 }
 0x1e4   :  { %p304_p7 = scmp.ne.s32.totalorder %s404_s4, %s303_s20  ;;  %p307_p8 = scmp.lt.u32.totalorder %s303_s20, %s404_s4 }
 0x1e6   :  { %p309_p9 = pnand %p307_p8, %p304_p7 }
 0x1e8   :  { %312 = shalt.err (!%p309_p9)
}
 0x1e9   :  { %205 = dma.vmem_to_hbm [thread:$0]  %s203_s17, 64, %s404_s4, [#allocation4]  }
 0x1ea   :  { %317 = dma.done.wait [#allocation4], 64  }
 0x1eb   :  { %318 = vsyncadd [#allocation4], 4294967232 }
 0x1ec   :  { %209 = vsyncpa [#allocation3], 1 }
 0x1ed   :  { %210 = vsyncpa [#allocation6], 1 }
 0x1ee   :  { %211 = vsyncpa [#allocation4], 1 }

</bundles_post_ra>
